<compile_context>
chip_gen: v6e
topology: v6e:2x2x1
jax: 0.10.0
libtpu: 0.0.40
codegen_flags: <defaults>
</compile_context>

<pallas_src>
import jax
import jax.numpy as jnp
from jax.experimental import pallas as pl
from jax.experimental.pallas import tpu as pltpu

NUM_HEADS = 8


def cross_attention_kernel(tcol_ref,   # (1, E, 1)  text embedding column for this batch
                           w_ref,      # (E, E)     fused (out_proj ∘ v in-proj ∘ text_proj)
                           b_ref,      # (E, 1)     fused bias
                           out_ref):   # (1, E, L)
    _, e_blk, l_blk = out_ref.shape
    t_col = tcol_ref[0]                                       # (E, 1)

    # All L keys/values are identical => softmax is uniform => the attention context
    # is the projected value row for every query.  Broadcast the text column along
    # the L lanes and run the single fused projection as a lane-dense (E,E)@(E,L)
    # MXU matmul whose result is exactly the output slab for this batch element.
    t_mat = jnp.broadcast_to(t_col, (e_blk, l_blk))           # (E, L), identical columns
    out = jnp.dot(w_ref[...], t_mat,
                  preferred_element_type=jnp.float32) + b_ref[...]       # (E, L)
    out_ref[0] = out.astype(out_ref.dtype)


def cross_attention(latent_nchw, text_embedding, params):
    """latent_nchw: (B, C_in, H, W), text_embedding: (B, E) -> (B, E, H, W)."""
    B, C_in, H, W = latent_nchw.shape
    E = params["wo"].shape[0]
    L = H * W

    # Latent values never reach the output (uniform softmax over identical keys):
    # only the post-conv shape (B, E, H, W) is needed.  conv / q / k weights are
    # accepted in `params` (full module state) but are mathematically dead here.

    # One-time, weight-only fusion (column form):
    #   out_col = wo @ ( wv @ ( wt @ t + bt ) + bv ) + bo
    #           = (wo @ wv @ wt) @ t  +  [ wo @ (wv @ bt + bv) + bo ]
    w_all = (params["wo"] @ params["wv"] @ params["wt"]).astype(jnp.float32)        # (E, E)
    b_all = (params["wo"] @ (params["wv"] @ params["bt"] + params["bv"])
             + params["bo"]).reshape(E, 1).astype(jnp.float32)                      # (E, 1)

    t_cols = text_embedding.astype(jnp.float32).reshape(B, E, 1)                    # (B, E, 1)

    out = pl.pallas_call(
        cross_attention_kernel,
        out_shape=jax.ShapeDtypeStruct((B, E, L), jnp.float32),
        grid=(B,),
        in_specs=[
            pl.BlockSpec((1, E, 1), lambda b: (b, 0, 0)),
            pl.BlockSpec((E, E), lambda b: (0, 0)),
            pl.BlockSpec((E, 1), lambda b: (0, 0)),
        ],
        out_specs=pl.BlockSpec((1, E, L), lambda b: (b, 0, 0)),
        compiler_params=pltpu.CompilerParams(dimension_semantics=("parallel",)),
    )(t_cols, w_all, b_all)

    # (B, E, L) is exactly what PyTorch's permute(1, 2, 0) produces; just reshape.
    return out.reshape(B, E, H, W)


def reference(latent_nchw, text_embedding, p):
    """Pure-JAX reference of the full PyTorch forward (conv + q/k/v + softmax)."""
    B, C_in, H, W = latent_nchw.shape
    E = p["wq"].shape[0]
    L = H * W
    x = latent_nchw.transpose(0, 2, 3, 1).reshape(B, L, C_in)
    lat_e = x @ p["wc"].T + p["bc"]                  # (B, L, E)
    tp = text_embedding @ p["wt"].T + p["bt"]        # (B, E)
    q = lat_e @ p["wq"].T + p["bq"]                  # (B, L, E)
    k = tp @ p["wk"].T + p["bk"]                     # (B, E)
    v = tp @ p["wv"].T + p["bv"]                     # (B, E)
    d = E // NUM_HEADS
    qh = (q / (d ** 0.5)).reshape(B, L, NUM_HEADS, d)
    kh = jnp.broadcast_to(k[:, None, :], (B, L, E)).reshape(B, L, NUM_HEADS, d)
    vh = jnp.broadcast_to(v[:, None, :], (B, L, E)).reshape(B, L, NUM_HEADS, d)
    s = jnp.einsum("bqhd,bkhd->bhqk", qh, kh)
    pm = jax.nn.softmax(s, axis=-1)
    ctx = jnp.einsum("bhqk,bkhd->bqhd", pm, vh).reshape(B, L, E)
    out = ctx @ p["wo"].T + p["bo"]
    return out.transpose(0, 2, 1).reshape(B, E, H, W)


def init_params(key, input_dim, embed_dim):
    ks = jax.random.split(key, 12)

    def w(k, shape, scale=0.2):
        return (scale * jax.random.normal(k, shape)).astype(jnp.float32)

    return {
        "wc": w(ks[0], (embed_dim, input_dim)),  "bc": w(ks[1], (embed_dim,)),
        "wt": w(ks[2], (embed_dim, embed_dim)),  "bt": w(ks[3], (embed_dim,)),
        "wq": w(ks[4], (embed_dim, embed_dim)),  "bq": w(ks[5], (embed_dim,)),
        "wk": w(ks[6], (embed_dim, embed_dim)),  "bk": w(ks[7], (embed_dim,)),
        "wv": w(ks[8], (embed_dim, embed_dim)),  "bv": w(ks[9], (embed_dim,)),
        "wo": w(ks[10], (embed_dim, embed_dim)), "bo": w(ks[11], (embed_dim,)),
    }


if __name__ == "__main__":
    B, C_in, H, W = 2, 4, 16, 16   # input_dim = 4
    E = 32                         # embed_dim = 32, num_heads = 8 -> head_dim = 4

    key = jax.random.PRNGKey(0)
    k_lat, k_txt, k_par = jax.random.split(key, 3)
    latent = jax.random.normal(k_lat, (B, C_in, H, W), dtype=jnp.float32)
    text = jax.random.normal(k_txt, (B, E), dtype=jnp.float32)
    params = init_params(k_par, C_in, E)

    out = jax.block_until_ready(cross_attention(latent, text, params))

    assert out.shape == (B, E, H, W)
    assert bool(jnp.all(jnp.isfinite(out)))
    ref = reference(latent, text, params)
    assert bool(jnp.allclose(out, ref, atol=3e-2, rtol=3e-2)), float(jnp.max(jnp.abs(out - ref)))

    print("KERNEL_OK")
</pallas_src>

<mosaic_0001>
module attributes {stable_mosaic.version = 11 : i64} {
  func.func @cross_attention_kernel(%arg0: i32, %arg1: memref<1x32x1xf32, #tpu.memory_space<vmem>>, %arg2: memref<32x32xf32, #tpu.memory_space<vmem>>, %arg3: memref<32x1xf32, #tpu.memory_space<vmem>>, %arg4: memref<1x32x256xf32, #tpu.memory_space<vmem>>) attributes {dimension_semantics = [#tpu.dimension_semantics<parallel>], iteration_bounds = array<i64: 2>, scalar_prefetch = 0 : i64, scratch_operands = 0 : i64, tpu.core_type = #tpu.core_type<tc>, window_params = [{transform_indices = @transform_0, window_bounds = array<i64: 1, 32, 1>}, {pipeline_mode = #tpu.pipeline_mode<synchronous>, transform_indices = @transform_1, window_bounds = array<i64: 32, 32>}, {pipeline_mode = #tpu.pipeline_mode<synchronous>, transform_indices = @transform_2, window_bounds = array<i64: 32, 1>}, {transform_indices = @transform_3, window_bounds = array<i64: 1, 32, 256>}]} {
    %c0 = arith.constant 0 : index
    %c0_0 = arith.constant 0 : index
    %c0_1 = arith.constant 0 : index
    %0 = vector.load %arg1[%c0, %c0_0, %c0_1] : memref<1x32x1xf32, #tpu.memory_space<vmem>>, vector<1x32x1xf32>
    %1 = vector.shape_cast %0 : vector<1x32x1xf32> to vector<32x1xf32>
    %2 = vector.shape_cast %1 : vector<32x1xf32> to vector<32x1xf32>
    %3 = vector.broadcast %2 : vector<32x1xf32> to vector<32x256xf32>
    %c0_2 = arith.constant 0 : index
    %c0_3 = arith.constant 0 : index
    %4 = vector.load %arg2[%c0_2, %c0_3] : memref<32x32xf32, #tpu.memory_space<vmem>>, vector<32x32xf32>
    %cst = arith.constant dense<0.000000e+00> : vector<32x256xf32>
    %5 = tpu.matmul %4, %3, %cst {dimension_numbers = #tpu.dot_dimension_numbers<[1], [0], [0], [1], [0, 0, 1, 1], [], []>} : vector<32x32xf32>, vector<32x256xf32>, vector<32x256xf32> -> vector<32x256xf32>
    %c0_4 = arith.constant 0 : index
    %c0_5 = arith.constant 0 : index
    %6 = vector.load %arg3[%c0_4, %c0_5] : memref<32x1xf32, #tpu.memory_space<vmem>>, vector<32x1xf32>
    %7 = vector.broadcast %6 : vector<32x1xf32> to vector<32x256xf32>
    %8 = arith.addf %5, %7 : vector<32x256xf32>
    %c0_6 = arith.constant 0 : index
    %c0_7 = arith.constant 0 : index
    %c0_8 = arith.constant 0 : index
    %9 = vector.load %arg4[%c0_6, %c0_7, %c0_8] : memref<1x32x256xf32, #tpu.memory_space<vmem>>, vector<1x32x256xf32>
    %10 = vector.shape_cast %9 : vector<1x32x256xf32> to vector<32x256xf32>
    %11 = vector.shape_cast %8 : vector<32x256xf32> to vector<1x32x256xf32>
    tpu.vector_store %arg4[%c0_6, %c0_7, %c0_8], %11 {strides = array<i32>} : memref<1x32x256xf32, #tpu.memory_space<vmem>>, vector<1x32x256xf32>,
    return
  }
  func.func @transform_0(%arg0: i32) -> (i32, i32, i32) {
    %c0_i32 = arith.constant 0 : i32
    %c0_i32_0 = arith.constant 0 : i32
    %c0_i32_1 = arith.constant 0 : i32
    return %arg0, %c0_i32, %c0_i32_0 : i32, i32, i32
  }
  func.func @transform_1(%arg0: i32) -> (i32, i32) {
    %c0_i32 = arith.constant 0 : i32
    %c0_i32_0 = arith.constant 0 : i32
    %c0_i32_1 = arith.constant 0 : i32
    return %c0_i32, %c0_i32_0 : i32, i32
  }
  func.func @transform_2(%arg0: i32) -> (i32, i32) {
    %c0_i32 = arith.constant 0 : i32
    %c0_i32_0 = arith.constant 0 : i32
    %c0_i32_1 = arith.constant 0 : i32
    return %c0_i32, %c0_i32_0 : i32, i32
  }
  func.func @transform_3(%arg0: i32) -> (i32, i32, i32) {
    %c0_i32 = arith.constant 0 : i32
    %c0_i32_0 = arith.constant 0 : i32
    %c0_i32_1 = arith.constant 0 : i32
    return %arg0, %c0_i32, %c0_i32_0 : i32, i32, i32
  }
}

</mosaic_0001>

<bundles_post_ra>
// kernel: tpu_custom_call.1
= control target key start
LH: loop header
LB: loop body
LE: loop exit
PB: predicated region body
PF: predicated region fallthrough
CT: control target
= control target key end

     0   :  { %8 = vsyncpa [#allocation3], 0  ;;  %s695_s0 = inlined_call_operand.vmem [shape: f32[2,32,1], index: 0, kind: input, shape index: {}]   ;;  %s696_s1 = inlined_call_operand.vmem [shape: f32[32,32], index: 1, kind: input, shape index: {}]   ;;  %s697_s2 = inlined_call_operand.vmem [shape: f32[32,1], index: 2, kind: input, shape index: {}]   ;;  %s698_s3 = inlined_call_operand.hbm [shape: f32[2,32,256], index: 3, kind: output, shape index: {}]  }
   0x1   :  { %10 = vsyncpa [#allocation3 + $0x1], 0  ;;  %s565_s12 = smov 0   ;;  %s567_s13 = smov 0  }
   0x2   :  { %s569_s14 = smov 0   ;;  %s571_s15 = smov 0  }
   0x3 LB: > { %s586_s16 = sadd.s32 4294967295, %s538_s15   ;;  %s407_s17 = sadd.s32 4294967294, %s538_s15   ;;  %s538_s15 = sphi %s571_s15, %s704_s15   ;;  %s534_s14 = sphi %s569_s14, %s703_s14   ;;  %s530_s13 = sphi %s567_s13, %s702_s13   ;;  %s526_s12 = sphi %s565_s12, %s701_s12  }
   0x4   : > { %s590_s18 = sadd.s32 1, %s538_s15   ;;  %s91_s19 = sadd.s32 1, %s534_s14 }
   0x5   : > { %s88_s20 = ssub.s32 %s538_s15, %s590_s18  ;;  %p101_p0 = scmp.ne.s32.totalorder %s534_s14, %s530_s13 }
   0x6   : > { %p89_p1 = scmp.eq.s32.totalorder %s88_s20, 0  ;;  %p102_p2 = scmp.eq.s32.totalorder %s586_s16, 1 }
   0x7   : > { %p107_p3 = scmp.ne.s32.totalorder %s530_s13, %s526_s12  ;;  %p108_p4 = scmp.eq.s32.totalorder %s407_s17, 1 }
   0x8   : > { %s601_s21 = scalar_select %p89_p1, %s534_s14, %s91_s19  }
   0x9   : > { %p603_p5 = por %p102_p2, %p101_p0  ;;  %p607_p6 = por %p108_p4, %p107_p3 }
   0xa   : > { %p410_p7 = scmp.ge.s32.totalorder %s538_s15, 1  ;;  %p140_p8 = scmp.lt.s32.totalorder %s538_s15, 3 }
   0xc   : > { %p141_p9 = pnand %p410_p7, %p140_p8 }
   0xd   : > { %p164_p10 = scmp.lt.s32.totalorder (!%p141_p9), %s586_s16, 1  ;;  %s161_s27 = sand.u32 (!%p141_p9), 1, %s530_s13  }
   0xe   : > { %144 = sbr.rel (%p141_p9) target bundleno = 373 (0x175), region = 32  ;;  %s424_s30 = sshll.u32 (!%p141_p9), %s586_s16, 10 }
   0xf   : > { %s649_s7 = scalar_lea.hbm (!%p141_p9), %s698_s3, %s424_s30  ;;  %s542_s9 = smov (!%p141_p9), [#allocation2]  }
  0x10   : > { %s482_s10 = sshll.u32 (!%p141_p9), %s542_s9, 4  ;;  %s483_s10 = int_to_ptr.vmem [resolvable:$false] %s482_s10 }
  0x11   : > { %s484_s11 = scalar_lea.vmem (!%p141_p9), %s483_s10, 2048 }
  0x13   : > { %v540_v0 = vmov 0   ;;  %s165_s24 = scalar_select %p164_p10, %s586_s16, 1  ;;  %v197_v5 = vld [vmem:[%s697_s2] sm:$0xff]  ;;  %v198_v6 = vld [vmem:[%s697_s2 + $0x8] sm:$0xff]  ;;  %v541_v7 = vmov 0.0   ;;  %v199_v8 = vld [vmem:[%s697_s2 + $0x10] sm:$0xff] }
  0x14   : > { %477 = vset.pattern.permute.xlu1 %v540_v0  ;;  %476 = vset.pattern.permute.xlu0 %v540_v0  ;;  %v200_v9 = vld [vmem:[%s697_s2 + $0x18] sm:$0xff]  ;;  %v193_v14 = vld [vmem:[%s696_s1] sm:$0xff]  ;;  %vm221_vm0 = vcmask 261120   ;;  %v195_v15 = vld [vmem:[%s696_s1 + $0x10] sm:$0xff]  ;;  %s655_s16 = scalar_lea.sflag [#allocation3], %s161_s27 }
  0x15   : > { %s423_s25 = sshll.u32 %s165_s24, 5  ;;  %298 = vmatprep.mubr.f32.mxu0 %v541_v7  ;;  %310 = vmatprep.mubr.f32.mxu1 %v541_v7  ;;  %v194_v16 = vld [vmem:[%s696_s1 + $0x8] sm:$0xff]  ;;  %v196_v17 = vld [vmem:[%s696_s1 + $0x18] sm:$0xff] }
  0x16   : > { %s168_s28 = scalar_lea.vmem %s695_s0, %s423_s25 }
  0x17   : > { %v172_v1 = vld [vmem:[%s168_s28 + $0x18] sm:$0xff]  ;;  %v170_v2 = vld [vmem:[%s168_s28 + $0x8] sm:$0xff]  ;;  %v171_v3 = vld [vmem:[%s168_s28 + $0x10] sm:$0xff] }
  0x18   : > { %190 = vperm.xlu0 %476, %v172_v1   ;;  %180 = vperm.xlu1 %477, %v170_v2   ;;  %v169_v4 = vld [vmem:[%s168_s28] sm:$0xff]  ;;  %s411_s28 = sshll.u32 %s161_s27, 6 }
  0x19   : > { %s163_s29 = scalar_lea.vmem [#allocation2], %s411_s28 }
  0x1a   : > { %s345_s4 = sshll.u32 %s163_s29, 4  ;;  %s651_s4 = int_to_ptr.vmem [resolvable:$true] %s345_s4 }
  0x1b   : > { %s478_s8 = scalar_lea.vmem %s651_s4, 1024  ;;  %p485_p0 = scmp.lt.s32.totalorder %s651_s4, %s483_s10 }
  0x1c   : > { %185 = vperm.xlu0 %476, %v171_v3   ;;  %175 = vperm.xlu1 %477, %v169_v4   ;;  %p479_p11 = scmp.ne.s32.totalorder %s651_s4, %s478_s8  ;;  %p486_p1 = scmp.lt.s32.totalorder %s484_s11, %s478_s8 }
  0x1e   : > { %p480_p12 = pnand %p479_p11, %p603_p5  ;;  %p487_p2 = por %p486_p1, %p485_p0 }
  0x20   : > { %203 = vperm.xlu0 %476, %v197_v5   ;;  %208 = vperm.xlu1 %477, %v198_v6   ;;  %p481_p13 = pneg %p480_p12 }
  0x22   : > { %p488_p3 = pnand %p487_p2, %p481_p13 }
  0x24   : > { %213 = vperm.xlu0 %476, %v199_v8   ;;  %218 = vperm.xlu1 %477, %v200_v9  }
  0x93   : > { %v191_v10 = vpop.permute.xlu0 %190  ;;  %v181_v11 = vpop.permute.xlu1 %180 }
  0x94   : > { %258 = vmatprep.subr.mxu0 %v191_v10  ;;  %425 = vmatprep.subr.mxu1 %v191_v10 }
  0x95   : > { %259 = vmatpush1.msra.mxu0 %v191_v10  ;;  %429 = vmatpush1.msra.mxu1 %v191_v10 }
  0x97   : > { %v186_v12 = vpop.permute.xlu0 %185  ;;  %v176_v13 = vpop.permute.xlu1 %175 }
  0x98   : > { %260 = vmatprep.subr.mxu0 %v186_v12  ;;  %426 = vmatprep.subr.mxu1 %v186_v12 }
  0x99   : > { %261 = vmatpush1.msra.mxu0 %v186_v12  ;;  %430 = vmatpush1.msra.mxu1 %v186_v12 }
  0x9a   : > { %262 = vmatprep.subr.mxu0 %v181_v11  ;;  %427 = vmatprep.subr.mxu1 %v181_v11 }
  0x9b   : > { %263 = vmatpush1.msra.mxu0 %v181_v11  ;;  %431 = vmatpush1.msra.mxu1 %v181_v11  ;;  %v204_v18 = vpop.permute.xlu0 %203  ;;  %v209_v19 = vpop.permute.xlu1 %208 }
  0x9c   : > { %264 = vmatprep.subr.mxu0 %v176_v13  ;;  %428 = vmatprep.subr.mxu1 %v176_v13 }
  0x9d   : > { %265 = vmatpush1.msra.mxu0 %v176_v13  ;;  %432 = vmatpush1.msra.mxu1 %v176_v13 }
  0x9e   : > { %414 = vmatmul.mubr.msk.f32.vlgmr.msra.gmra.mxu0 %vm221_vm0, %v193_v14  ;;  %416 = vmatmul.mubr.msk.f32.vlgmr.msra.gmra.mxu1 %vm221_vm0, %v195_v15 }
  0x9f   : > { %304 = vmatprep.mubr.f32.mxu0 %v541_v7  ;;  %316 = vmatprep.mubr.f32.mxu1 %v541_v7  ;;  %v214_v20 = vpop.permute.xlu0 %213  ;;  %v219_v27 = vpop.permute.xlu1 %218 }
  0xa2   : > { %415 = vmatmul.mubr.msk.f32.gmra.mxu0 %vm221_vm0, %v194_v16  ;;  %417 = vmatmul.mubr.msk.f32.gmra.mxu1 %vm221_vm0, %v196_v17 }
 0x15e   : > { %v300_v21 = vpop.f32.mrf.mxu0  ;;  %v312_v22 = vpop.f32.mrf.mxu1 }
 0x15f   : > { %v301_v23 = vadd.f32 %v300_v21, %v204_v18  ;;  %v313_v24 = vadd.f32 %v312_v22, %v214_v20 }
 0x160   : > { %v302_v25 = vpop.f32.mrf.mxu0  ;;  %v314_v26 = vpop.f32.mrf.mxu1 }
 0x161   : > { %323 = vst [vmem:[%s163_s29] sm:$0xff] %v301_v23  ;;  %327 = vst [vmem:[%s163_s29 + $0x20] sm:$0xff] %v313_v24  ;;  %v303_v28 = vadd.f32 %v302_v25, %v204_v18  ;;  %v315_v29 = vadd.f32 %v314_v26, %v214_v20 }
 0x162   : > { %v306_v30 = vpop.f32.mrf.mxu0  ;;  %v318_v31 = vpop.f32.mrf.mxu1 }
 0x163   : > { %324 = vst [vmem:[%s163_s29 + $0x8] sm:$0xff] %v303_v28  ;;  %328 = vst [vmem:[%s163_s29 + $0x28] sm:$0xff] %v315_v29  ;;  %v307_v32 = vadd.f32 %v306_v30, %v209_v19  ;;  %v319_v33 = vadd.f32 %v318_v31, %v219_v27 }
 0x164   : > { %v308_v34 = vpop.f32.mrf.mxu0  ;;  %v320_v35 = vpop.f32.mrf.mxu1 }
 0x165   : > { %325 = vst [vmem:[%s163_s29 + $0x10] sm:$0xff] %v307_v32  ;;  %329 = vst [vmem:[%s163_s29 + $0x30] sm:$0xff] %v319_v33  ;;  %v309_v36 = vadd.f32 %v308_v34, %v209_v19  ;;  %v321_v37 = vadd.f32 %v320_v35, %v219_v27 }
 0x167   : > { %326 = vst [vmem:[%s163_s29 + $0x18] sm:$0xff] %v309_v36  ;;  %330 = vst [vmem:[%s163_s29 + $0x38] sm:$0xff] %v321_v37 }
 0x168   : > { %491 = shalt.err (!%p488_p3)
}
 0x169   : > { %s492_s17 = scalar_lea.hbm %s649_s7, 1024  ;;  %s496_s24 = scalar_lea.hbm %s698_s3, 2048 }
 0x16a   : > { %p493_p4 = scmp.ne.s32.totalorder %s649_s7, %s492_s17  ;;  %p497_p9 = scmp.lt.s32.totalorder %s649_s7, %s698_s3 }
 0x16b   : > { %p498_p10 = scmp.lt.s32.totalorder %s496_s24, %s492_s17 }
 0x16c   : > { %p494_p7 = pnand %p493_p4, %p603_p5 }
 0x16d   : > { %p499_p11 = por %p498_p10, %p497_p9 }
 0x16e   : > { %p495_p8 = pneg %p494_p7 }
 0x170   : > { %p500_p12 = pnand %p499_p11, %p495_p8 }
 0x172   : > { %503 = shalt.err (!%p500_p12)
}
 0x173   : > { %s543_s27 = smov 256   ;;  %s544_s28 = smov 16  }
 0x174   : > { %433 = dma.vmem_to_hbm [thread:$0]  (%p603_p5), %s651_s4, 1024, %s649_s7, %s655_s16, %s543_s27, %s543_s27, %s544_s28  }
 0x175 PF: > { %p439_p13 = scmp.ge.s32.totalorder %s538_s15, 2  ;;  %s360_s29 = sand.u32 1, %s526_s12  }
 0x176   : > { %s361_s30 = scalar_lea.sflag [#allocation3], %s360_s29 }
 0x177   : > { %p436_p0 = pnand %p439_p13, %p607_p6 }
 0x179   : > { %p437_p1 = pneg %p436_p0 }
 0x17b   : > { %521 = dma.done.wait (%p437_p1), %s361_s30, 1024  }
 0x17c   : > { %523 = vsyncadd (%p437_p1), %s361_s30, 4294966272  ;;  %p13_p2 = scmp.ge.s32.totalorder %s590_s18, 4   ;;  %s701_s12 = smov %s530_s13 }
 0x17d   : > { %s702_s13 = smov %s534_s14  ;;  %s703_s14 = smov %s601_s21 }
 0x17e   : > { %s704_s15 = smov %s590_s18  ;;  %15 = sbr.rel (!%p13_p2) target bundleno = 3 (0x3), region = 67 }
 0x183   :  { %366 = vsyncpa [#allocation3], 1 }
 0x184   :  { %368 = vsyncpa [#allocation3 + $0x1], 1 }

</bundles_post_ra>
